<compile_context>
chip_gen: v7x
topology: tpu7x:2x2x1
jax: 0.10.0
libtpu: 0.0.40
codegen_flags: <defaults>
</compile_context>

<pallas_src>
import functools

import jax
import jax.numpy as jnp
from jax import lax
from jax.experimental import pallas as pl
from jax.experimental.pallas import tpu as pltpu


def _round_up(n, m):
    return ((n + m - 1) // m) * m


def mlp_kernel(x_ref, w1_ref, b1_ref, w2_ref, b2_ref, w3_ref, b3_ref, o_ref):
    x = x_ref[...].astype(jnp.float32)                       # (tb, 20)
    # Layer 1 (MXU): (tb, 20) @ (20, 64), f32 accumulate.
    h1 = jnp.dot(x, w1_ref[...], preferred_element_type=jnp.float32)
    h1 = jnp.maximum(h1 + b1_ref[...], 0.0)                  # (tb, 64)
    # Layer 2 (MXU): (tb, 64) @ (64, 64).
    h2 = jnp.dot(h1, w2_ref[...], preferred_element_type=jnp.float32)
    h2 = jnp.maximum(h2 + b2_ref[...], 0.0)                  # (tb, 64)
    # Layer 3: contract w3 (1, 64) with h2 (tb, 64) over the feature dim
    # -> (1, tb) lane-dense row (keeps the writeback off the masked-store path).
    out_row = lax.dot_general(
        w3_ref[...], h2, (((1,), (1,)), ((), ())),
        preferred_element_type=jnp.float32) + b3_ref[0]
    o_ref[0] = out_row.astype(o_ref.dtype)                   # block is (1, 1, tb)


@functools.partial(jax.jit, static_argnames=("tb",))
def complex_model_forward(x, params, *, tb=8192):
    """x: [B, 20] float. params from init_params(). Returns [B, 1] float32."""
    w1, b1, w2, b2, w3, b3 = params
    B, F = x.shape

    # Tile sizing: multiple of 8 sublanes; keep >= 2 grid steps when B allows
    # it (v7x has 2 TensorCores); fall back to one full-extent block for tiny B.
    cap = _round_up(-(-B // 2), 8)                 # round_up(cdiv(B, 2), 8)
    tb = _round_up(max(8, min(int(tb), cap)), 8)
    if tb >= B:
        tb = B
    nb = -(-B // tb)                               # cdiv(B, tb)

    x_spec = pl.BlockSpec((tb, F), lambda i: (i, 0))
    out_spec = pl.BlockSpec((1, 1, tb), lambda i: (i, 0, 0))

    # Weights/biases: full-extent blocks, constant index_map -> DMA'd once and
    # VMEM-resident across all grid steps.
    def resident(a):
        n = a.ndim
        return pl.BlockSpec(a.shape, lambda i: (0,) * n)

    smem_scalar = pl.BlockSpec(memory_space=pltpu.MemorySpace.SMEM)

    flops = 2 * B * (20 * 64 + 64 * 64 + 64)
    bytes_accessed = (x.size * x.dtype.itemsize + B * 4
                      + sum(a.size * a.dtype.itemsize for a in params))
    cost = pl.CostEstimate(flops=flops, transcendentals=0,
                           bytes_accessed=bytes_accessed)

    out = pl.pallas_call(
        mlp_kernel,
        out_shape=jax.ShapeDtypeStruct((nb, 1, tb), jnp.float32),
        grid=(nb,),
        in_specs=[x_spec, resident(w1), resident(b1), resident(w2),
                  resident(b2), resident(w3), smem_scalar],
        out_specs=out_spec,
        compiler_params=pltpu.CompilerParams(
            dimension_semantics=("parallel",),
            vmem_limit_bytes=40 * 1024 * 1024),
        cost_estimate=cost,
    )(x, w1, b1, w2, b2, w3, b3)

    out = out.reshape(nb * tb, 1)
    if nb * tb != B:
        out = out[:B]          # drop rows coming from the padded last block
    return out


def init_params(key):
    """Parameters matching the PyTorch module, stored as [in, out]
    (transposed relative to nn.Linear's [out, in]); w3 kept as a (1, 64) row
    and b3 as a (1,) scalar (placed in SMEM inside the kernel). All float32,
    like the PyTorch model."""
    k1, k2, k3 = jax.random.split(key, 3)
    w1 = jax.random.normal(k1, (20, 64), jnp.float32) * 0.1
    b1 = jnp.zeros((1, 64), jnp.float32)
    w2 = jax.random.normal(k2, (64, 64), jnp.float32) * 0.1
    b2 = jnp.zeros((1, 64), jnp.float32)
    w3 = jax.random.normal(k3, (1, 64), jnp.float32) * 0.1
    b3 = jnp.zeros((1,), jnp.float32)
    return w1, b1, w2, b2, w3, b3


def reference_forward(x, params):
    """Pure-JAX f32 reference matching the PyTorch forward."""
    w1, b1, w2, b2, w3, b3 = params
    xf = x.astype(jnp.float32)
    h1 = jnp.maximum(xf @ w1 + b1, 0.0)
    h2 = jnp.maximum(h1 @ w2 + b2, 0.0)
    return h2 @ w3.T + b3


if __name__ == "__main__":
    key = jax.random.PRNGKey(0)
    kx, kp, kx2, kx3 = jax.random.split(key, 4)
    params = init_params(kp)

    # Small-shape check (single grid step, full-extent batch block).
    x = jax.random.normal(kx, (8, 20), jnp.float32)
    out = jax.block_until_ready(complex_model_forward(x, params))
    ref = reference_forward(x, params)
    assert out.shape == (8, 1), out.shape
    assert jnp.allclose(out, ref, atol=2e-2, rtol=2e-2), (
        f"max abs err {jnp.max(jnp.abs(out - ref))}")

    # Gridded check: 4 grid steps, resident weights, lane-dense output path.
    x2 = jax.random.normal(kx2, (64, 20), jnp.float32)
    out2 = jax.block_until_ready(complex_model_forward(x2, params, tb=16))
    ref2 = reference_forward(x2, params)
    assert out2.shape == (64, 1), out2.shape
    assert jnp.allclose(out2, ref2, atol=2e-2, rtol=2e-2), (
        f"max abs err {jnp.max(jnp.abs(out2 - ref2))}")

    # Ragged check: B not a multiple of the tile (padded last block sliced off).
    x3 = jax.random.normal(kx3, (52, 20), jnp.float32)
    out3 = jax.block_until_ready(complex_model_forward(x3, params, tb=16))
    ref3 = reference_forward(x3, params)
    assert out3.shape == (52, 1), out3.shape
    assert jnp.allclose(out3, ref3, atol=2e-2, rtol=2e-2), (
        f"max abs err {jnp.max(jnp.abs(out3 - ref3))}")

    print("KERNEL_OK")
</pallas_src>

<mosaic_0001>
module attributes {stable_mosaic.version = 11 : i64} {
  func.func @mlp_kernel(%arg0: i32, %arg1: memref<8x20xf32, #tpu.memory_space<vmem>>, %arg2: memref<20x64xf32, #tpu.memory_space<vmem>>, %arg3: memref<1x64xf32, #tpu.memory_space<vmem>>, %arg4: memref<64x64xf32, #tpu.memory_space<vmem>>, %arg5: memref<1x64xf32, #tpu.memory_space<vmem>>, %arg6: memref<1x64xf32, #tpu.memory_space<vmem>>, %arg7: memref<1xf32, #tpu.memory_space<smem>>, %arg8: memref<1x1x8xf32, #tpu.memory_space<vmem>>) attributes {dimension_semantics = [#tpu.dimension_semantics<parallel>], iteration_bounds = array<i64: 1>, scalar_prefetch = 0 : i64, scratch_operands = 0 : i64, tpu.core_type = #tpu.core_type<tc>, window_params = [{transform_indices = @transform_0, window_bounds = array<i64: 8, 20>}, {pipeline_mode = #tpu.pipeline_mode<synchronous>, transform_indices = @transform_1, window_bounds = array<i64: 20, 64>}, {pipeline_mode = #tpu.pipeline_mode<synchronous>, transform_indices = @transform_2, window_bounds = array<i64: 1, 64>}, {pipeline_mode = #tpu.pipeline_mode<synchronous>, transform_indices = @transform_3, window_bounds = array<i64: 64, 64>}, {pipeline_mode = #tpu.pipeline_mode<synchronous>, transform_indices = @transform_4, window_bounds = array<i64: 1, 64>}, {pipeline_mode = #tpu.pipeline_mode<synchronous>, transform_indices = @transform_5, window_bounds = array<i64: 1, 64>}, {transform_indices = @transform_6, window_bounds = array<i64: 1>}, {transform_indices = @transform_7, window_bounds = array<i64: 1, 1, 8>}]} {
    %c0 = arith.constant 0 : index
    %c0_0 = arith.constant 0 : index
    %0 = vector.load %arg1[%c0, %c0_0] : memref<8x20xf32, #tpu.memory_space<vmem>>, vector<8x20xf32>
    %c0_1 = arith.constant 0 : index
    %c0_2 = arith.constant 0 : index
    %1 = vector.load %arg2[%c0_1, %c0_2] : memref<20x64xf32, #tpu.memory_space<vmem>>, vector<20x64xf32>
    %cst = arith.constant dense<0.000000e+00> : vector<8x64xf32>
    %2 = tpu.matmul %0, %1, %cst {dimension_numbers = #tpu.dot_dimension_numbers<[1], [0], [0], [1], [0, 0, 1, 1], [], []>} : vector<8x20xf32>, vector<20x64xf32>, vector<8x64xf32> -> vector<8x64xf32>
    %c0_3 = arith.constant 0 : index
    %c0_4 = arith.constant 0 : index
    %3 = vector.load %arg3[%c0_3, %c0_4] : memref<1x64xf32, #tpu.memory_space<vmem>>, vector<1x64xf32>
    %4 = vector.broadcast %3 : vector<1x64xf32> to vector<8x64xf32>
    %5 = arith.addf %2, %4 : vector<8x64xf32>
    %cst_5 = arith.constant 0.000000e+00 : f32
    %6 = vector.broadcast %cst_5 : f32 to vector<8x64xf32>
    %7 = arith.maximumf %5, %6 : vector<8x64xf32>
    %c0_6 = arith.constant 0 : index
    %c0_7 = arith.constant 0 : index
    %8 = vector.load %arg4[%c0_6, %c0_7] : memref<64x64xf32, #tpu.memory_space<vmem>>, vector<64x64xf32>
    %cst_8 = arith.constant dense<0.000000e+00> : vector<8x64xf32>
    %9 = tpu.matmul %7, %8, %cst_8 {dimension_numbers = #tpu.dot_dimension_numbers<[1], [0], [0], [1], [0, 0, 1, 1], [], []>} : vector<8x64xf32>, vector<64x64xf32>, vector<8x64xf32> -> vector<8x64xf32>
    %c0_9 = arith.constant 0 : index
    %c0_10 = arith.constant 0 : index
    %10 = vector.load %arg5[%c0_9, %c0_10] : memref<1x64xf32, #tpu.memory_space<vmem>>, vector<1x64xf32>
    %11 = vector.broadcast %10 : vector<1x64xf32> to vector<8x64xf32>
    %12 = arith.addf %9, %11 : vector<8x64xf32>
    %cst_11 = arith.constant 0.000000e+00 : f32
    %13 = vector.broadcast %cst_11 : f32 to vector<8x64xf32>
    %14 = arith.maximumf %12, %13 : vector<8x64xf32>
    %c0_12 = arith.constant 0 : index
    %c0_13 = arith.constant 0 : index
    %15 = vector.load %arg6[%c0_12, %c0_13] : memref<1x64xf32, #tpu.memory_space<vmem>>, vector<1x64xf32>
    %cst_14 = arith.constant dense<0.000000e+00> : vector<1x8xf32>
    %16 = tpu.matmul %15, %14, %cst_14 {dimension_numbers = #tpu.dot_dimension_numbers<[1], [1], [0], [0], [0, 0, 1, 0], [], []>} : vector<1x64xf32>, vector<8x64xf32>, vector<1x8xf32> -> vector<1x8xf32>
    %c0_15 = arith.constant 0 : index
    %17 = memref.load %arg7[%c0_15] : memref<1xf32, #tpu.memory_space<smem>>
    %18 = vector.broadcast %17 : f32 to vector<1x8xf32>
    %19 = arith.addf %16, %18 : vector<1x8xf32>
    %c0_16 = arith.constant 0 : index
    %c0_17 = arith.constant 0 : index
    %c0_18 = arith.constant 0 : index
    %20 = vector.load %arg8[%c0_16, %c0_17, %c0_18] : memref<1x1x8xf32, #tpu.memory_space<vmem>>, vector<1x1x8xf32>
    %21 = vector.shape_cast %20 : vector<1x1x8xf32> to vector<1x8xf32>
    %22 = vector.shape_cast %19 : vector<1x8xf32> to vector<1x1x8xf32>
    tpu.vector_store %arg8[%c0_16, %c0_17, %c0_18], %22 {strides = array<i32>} : memref<1x1x8xf32, #tpu.memory_space<vmem>>, vector<1x1x8xf32>,
    return
  }
  func.func @transform_0(%arg0: i32) -> (i32, i32) {
    %c0_i32 = arith.constant 0 : i32
    %c0_i32_0 = arith.constant 0 : i32
    return %arg0, %c0_i32 : i32, i32
  }
  func.func @transform_1(%arg0: i32) -> (i32, i32) {
    %c0_i32 = arith.constant 0 : i32
    %c0_i32_0 = arith.constant 0 : i32
    %c0_i32_1 = arith.constant 0 : i32
    return %c0_i32, %c0_i32_0 : i32, i32
  }
  func.func @transform_2(%arg0: i32) -> (i32, i32) {
    %c0_i32 = arith.constant 0 : i32
    %c0_i32_0 = arith.constant 0 : i32
    %c0_i32_1 = arith.constant 0 : i32
    return %c0_i32, %c0_i32_0 : i32, i32
  }
  func.func @transform_3(%arg0: i32) -> (i32, i32) {
    %c0_i32 = arith.constant 0 : i32
    %c0_i32_0 = arith.constant 0 : i32
    %c0_i32_1 = arith.constant 0 : i32
    return %c0_i32, %c0_i32_0 : i32, i32
  }
  func.func @transform_4(%arg0: i32) -> (i32, i32) {
    %c0_i32 = arith.constant 0 : i32
    %c0_i32_0 = arith.constant 0 : i32
    %c0_i32_1 = arith.constant 0 : i32
    return %c0_i32, %c0_i32_0 : i32, i32
  }
  func.func @transform_5(%arg0: i32) -> (i32, i32) {
    %c0_i32 = arith.constant 0 : i32
    %c0_i32_0 = arith.constant 0 : i32
    %c0_i32_1 = arith.constant 0 : i32
    return %c0_i32, %c0_i32_0 : i32, i32
  }
  func.func @transform_6(%arg0: i32) -> i32 {
    %c0_i32 = arith.constant 0 : i32
    %c0_i32_0 = arith.constant 0 : i32
    return %c0_i32 : i32
  }
  func.func @transform_7(%arg0: i32) -> (i32, i32, i32) {
    %c0_i32 = arith.constant 0 : i32
    %c0_i32_0 = arith.constant 0 : i32
    %c0_i32_1 = arith.constant 0 : i32
    return %arg0, %c0_i32, %c0_i32_0 : i32, i32, i32
  }
}

</mosaic_0001>

<bundles_post_ra>
// kernel: complex_model_forward.1
= control target key start
LH: loop header
LB: loop body
LE: loop exit
PB: predicated region body
PF: predicated region fallthrough
CT: control target
= control target key end

     0   :  { %13 = vsyncpa [#allocation4], 0  ;;  %s635_s0 = inlined_call_operand.hbm [shape: f32[8,20], index: 0, kind: input, shape index: {}]   ;;  %s636_s1 = inlined_call_operand.hbm [shape: f32[20,64], index: 1, kind: input, shape index: {}]   ;;  %s637_s2 = inlined_call_operand.vmem [shape: f32[1,64], index: 2, kind: input, shape index: {}]   ;;  %s638_s3 = inlined_call_operand.hbm [shape: f32[64,64], index: 3, kind: input, shape index: {}]   ;;  %s639_s4 = inlined_call_operand.vmem [shape: f32[1,64], index: 4, kind: input, shape index: {}]   ;;  %s640_s5 = inlined_call_operand.vmem [shape: f32[1,64], index: 5, kind: input, shape index: {}]   ;;  %s641_s6 = inlined_call_operand.<no memory space> [shape: f32[1], index: 6, kind: input, shape index: {}]   ;;  %s642_s7 = inlined_call_operand.hbm [shape: f32[1,1,8], index: 7, kind: output, shape index: {}]  }
   0x1   :  { %14 = vsyncpa [#allocation7], 0 }
   0x2   :  { %15 = vsyncpa [#allocation5], 0  ;;  %s517_s24 = smov [#allocation6]   ;;  %s423_s28 = scalar_lea.hbm %s636_s1, 384 }
   0x3   :  { %s31_s25 = sshll.u32 %s517_s24, 4  ;;  %p424_p0 = scmp.ne.s32.totalorder %s636_s1, %s423_s28  ;;  %s32_s25 = int_to_ptr.vmem [resolvable:$true] %s31_s25 }
   0x4   :  { %p427_p1 = scmp.lt.u32.totalorder %s423_s28, %s636_s1 }
   0x6   :  { %p429_p2 = pnand %p427_p1, %p424_p0 }
   0x8   :  { %432 = shalt.err (!%p429_p2)
}
   0x9   :  { %s433_s10 = scalar_lea.vmem %s32_s25, 384  ;;  %p438_p4 = scmp.lt.s32.totalorder %s32_s25, %s32_s25 }
   0xa   :  { %p434_p3 = scmp.ne.s32.totalorder %s32_s25, %s433_s10  ;;  %p439_p5 = scmp.lt.s32.totalorder %s433_s10, %s433_s10 }
   0xc   :  { %p440_p6 = por %p439_p5, %p438_p4 }
   0xe   :  { %p441_p7 = pnand %p440_p6, %p434_p3 }
  0x10   :  { %444 = shalt.err (!%p441_p7)
}
  0x11   :  { %s518_s11 = smov 128   ;;  %s519_s12 = smov 8  }
  0x12   :  { %37 = dma.hbm_to_vmem [thread:$0]  %s636_s1, 384, %s32_s25, [#allocation7], %s518_s11, %s518_s11, %s519_s12  }
  0x13   :  { %s520_s15 = smov [#allocation3]   ;;  %s521_s17 = smov [#allocation8]  }
  0x14   :  { %s22_s16 = sshll.u32 %s520_s15, 4  ;;  %s45_s18 = sshll.u32 %s521_s17, 4  ;;  %s23_s16 = int_to_ptr.vmem [resolvable:$true] %s22_s16  ;;  %s46_s18 = int_to_ptr.vmem [resolvable:$true] %s45_s18 }
  0x15   :  { %s445_s21 = scalar_lea.hbm %s635_s0, 128 }
  0x16   :  { %p446_p8 = scmp.ne.s32.totalorder %s635_s0, %s445_s21  ;;  %p449_p9 = scmp.lt.u32.totalorder %s445_s21, %s635_s0 }
  0x18   :  { %p451_p10 = pnand %p449_p9, %p446_p8 }
  0x1a   :  { %454 = shalt.err (!%p451_p10)
}
  0x1b   :  { %s455_s1 = scalar_lea.vmem %s23_s16, 128  ;;  %p460_p12 = scmp.lt.s32.totalorder %s23_s16, %s23_s16 }
  0x1c   :  { %p456_p11 = scmp.ne.s32.totalorder %s23_s16, %s455_s1  ;;  %p461_p13 = scmp.lt.s32.totalorder %s455_s1, %s455_s1 }
  0x1e   :  { %p462_p0 = por %p461_p13, %p460_p12 }
  0x20   :  { %p463_p1 = pnand %p462_p0, %p456_p11 }
  0x22   :  { %466 = shalt.err (!%p463_p1)
}
  0x23   :  { %25 = dma.hbm_to_vmem [thread:$0]  %s635_s0, 128, %s23_s16, [#allocation4]  }
  0x24   :  { %s467_s30 = scalar_lea.hbm %s638_s3, 1024 }
  0x25   :  { %p468_p2 = scmp.ne.s32.totalorder %s638_s3, %s467_s30  ;;  %p471_p3 = scmp.lt.u32.totalorder %s467_s30, %s638_s3 }
  0x27   :  { %p473_p4 = pnand %p471_p3, %p468_p2 }
  0x29   :  { %476 = shalt.err (!%p473_p4)
}
  0x2a   :  { %s477_s14 = scalar_lea.vmem %s46_s18, 1024  ;;  %p482_p6 = scmp.lt.s32.totalorder %s46_s18, %s46_s18 }
  0x2b   :  { %p478_p5 = scmp.ne.s32.totalorder %s46_s18, %s477_s14  ;;  %p483_p7 = scmp.lt.s32.totalorder %s477_s14, %s477_s14 }
  0x2d   :  { %p484_p8 = por %p483_p7, %p482_p6 }
  0x2f   :  { %p485_p9 = pnand %p484_p8, %p478_p5 }
  0x31   :  { %488 = shalt.err (!%p485_p9)
}
  0x32   :  { %51 = dma.hbm_to_vmem [thread:$0]  %s638_s3, 1024, %s46_s18, [#allocation7], %s518_s11, %s518_s11, %s519_s12  }
  0x33   :  { %511 = dma.done.wait [#allocation4], 128  }
  0x34   :  { %512 = vsyncadd [#allocation4], 4294967168 }
  0x35   :  { %513 = dma.done.wait [#allocation7], 1408  }
  0x36   :  { %514 = vsyncadd [#allocation7], 4294965888  ;;  %v522_v0 = vmov 0.0|0.0   ;;  %vm523_vm0 = vmmov 0   ;;  %v524_v1 = vmov 0.0   ;;  %v68_v2 = vld [vmem:[#allocation6] sm:$0xff]  ;;  %v249_v30 = vstv %s641_s6 }
  0x37   :  { %399 = vmatprep.subr.bf16.mxu0 %v522_v0  ;;  %372 = vmatprep.mubr.msk.f32.mxu0 %vm523_vm0, %v524_v1  ;;  %v69_v3 = vld [vmem:[#allocation6 + $0x8] sm:$0xff]  ;;  %v157_v5 = vld [vmem:[#allocation8] sm:$0xff]  ;;  %v158_v6 = vld [vmem:[#allocation8 + $0x8] sm:$0xff]  ;;  %vm82_vm1 = vcmask 1043456   ;;  %vm78_vm2 = vcmask 162816   ;;  %vm172_vm3 = vcmask 523264  }
  0x38   :  { %402 = vmatprep.subr.bf16.mxu1 %v522_v0  ;;  %391 = vmatprep.mubr.msk.f32.mxu1 %vm523_vm0, %v524_v1  ;;  %v400_v4 = vpack.c.bf16 %v69_v3, %v68_v2  ;;  %v403_v7 = vpack.c.bf16 %v158_v6, %v157_v5  ;;  %v159_v8 = vld [vmem:[#allocation8 + $0x10] sm:$0xff]  ;;  %v160_v9 = vld [vmem:[#allocation8 + $0x18] sm:$0xff]  ;;  %v67_v12 = vld [vmem:[#allocation3] sm:$0xff]  ;;  %s525_s20 = smov [#allocation9]   ;;  %vm326_vm4 = vcmask 57344  }
  0x39   :  { %v70_v10 = vld [vmem:[#allocation6 + $0x10] sm:$0xf]  ;;  %v406_v11 = vpack.c.bf16 %v160_v9, %v159_v8  ;;  %v161_v13 = vld [vmem:[#allocation8 + $0x20] sm:$0xff]  ;;  %v162_v14 = vld [vmem:[#allocation8 + $0x28] sm:$0xff]  ;;  %s334_s21 = sshll.u32 %s525_s20, 4  ;;  %s335_s21 = int_to_ptr.vmem [resolvable:$true] %s334_s21 }
  0x3a   :  { %401 = vmatpush3.bf16.msra.mxu0 %v400_v4  ;;  %404 = vmatpush3.bf16.msra.mxu1 %v403_v7  ;;  %v409_v15 = vpack.c.bf16 %v162_v14, %v161_v13  ;;  %v163_v16 = vld [vmem:[#allocation8 + $0x30] sm:$0xff]  ;;  %v164_v17 = vld [vmem:[#allocation8 + $0x38] sm:$0xff]  ;;  %v344_v19 = vld [vmem:[%s637_s2] ss:$0 sm:$0xff]  ;;  %s493_s22 = scalar_lea.vmem %s335_s21, 32  ;;  %p494_p11 = scmp.lt.s32.totalorder %s335_s21, %s335_s21 }
  0x3b   :  { %370 = vmatprep.subr.mxu0 %v524_v1  ;;  %405 = vmatprep.subr.bf16.mxu1 %v522_v0  ;;  %v412_v18 = vpack.c.bf16 %v164_v17, %v163_v16  ;;  %v347_v24 = vld [vmem:[%s639_s4] ss:$0 sm:$0xff]  ;;  %s489_s4 = scalar_lea.vmem %s335_s21, 16 }
  0x3c   :  { %v247_v29 = vld [vmem:[%s640_s5] sm:$0x1]  ;;  %p490_p10 = scmp.ne.s32.totalorder %s335_s21, %s489_s4  ;;  %p495_p12 = scmp.lt.s32.totalorder %s493_s22, %s489_s4 }
  0x3e   :  { %371 = vmatpush3.msk.msra.mxu0 %vm82_vm1, %v70_v10  ;;  %407 = vmatpush3.bf16.msra.mxu1 %v406_v11  ;;  %p496_p13 = por %p495_p12, %p494_p11 }
  0x3f   :  { %373 = vmatmul.mubr.msk.f32.vlgmr.msra.gmra.mrb[0].mxu0 %vm78_vm2, %v67_v12  ;;  %408 = vmatprep.subr.bf16.mxu1 %v522_v0 }
  0x40   :  { %394 = vmatprep.subr.mxu0 %v524_v1  ;;  %396 = vmatprep.mubr.msk.f32.mxu0 %vm523_vm0, %v524_v1  ;;  %p497_p0 = pnand %p496_p13, %p490_p10 }
  0x42   :  { %410 = vmatpush3.bf16.msra.mxu1 %v409_v15 }
  0x43   :  { %411 = vmatprep.subr.bf16.mxu1 %v522_v0 }
  0x46   :  { %413 = vmatpush3.bf16.msra.mxu1 %v412_v18 }
 0x112   :  { %v152_v20 = vpop.f32.mrb[0].mxu0 }
 0x113   :  { %v153_v21 = vadd.f32 %v344_v19, %v152_v20  ;;  %v374_v22 = vpop.f32.mrb[1].mxu0 }
 0x115   :  { %v156_v23 = vmax.f32 %v153_v21, 0.0 }
 0x117   :  { %392 = vmatmul.mubr.msk.f32.vlgmr.msra.gmra.mrb[0].mxu1 %vm172_vm3, %v156_v23 }
 0x1ea   :  { %v242_v25 = vpop.f32.mrb[0].mxu1 }
 0x1eb   :  { %v243_v26 = vadd.f32 %v347_v24, %v242_v25  ;;  %v393_v27 = vpop.f32.mrb[1].mxu1 }
 0x1ed   :  { %v246_v28 = vmax.f32 %v243_v26, 0.0 }
 0x1ef   :  { %395 = vmatpush3.xpose.msk.msra.mxu0 %vm172_vm3, %v246_v28 }
 0x1f2   :  { %397 = vmatmul.mubr.msk.f32.vlgmr.msra.gmra.mrb[2].mxu0 %vm172_vm3, %v247_v29 }
 0x2c5   :  { %v322_v31 = vpop.f32.mrb[2].mxu0 }
 0x2c6   :  { %v323_v32 = vadd.f32 %v322_v31, %v249_v30  ;;  %v398_v33 = vpop.f32.mrb[3].mxu0 }
 0x2c8   :  { %327 = vst.msk [vmem:[#allocation9] sm:$0x1] %vm326_vm4, %v323_v32 }
 0x2c9   :  { %500 = shalt.err (!%p497_p0)
}
 0x2ca   :  { %s501_s6 = scalar_lea.hbm %s642_s7, 16 }
 0x2cb   :  { %p502_p1 = scmp.ne.s32.totalorder %s642_s7, %s501_s6  ;;  %p505_p2 = scmp.lt.u32.totalorder %s501_s6, %s642_s7 }
 0x2cd   :  { %p507_p3 = pnand %p505_p2, %p502_p1 }
 0x2cf   :  { %510 = shalt.err (!%p507_p3)
}
 0x2d0   :  { %337 = dma.vmem_to_hbm [thread:$0]  %s335_s21, 16, %s642_s7, [#allocation5]  }
 0x2d1   :  { %515 = dma.done.wait [#allocation5], 16  }
 0x2d2   :  { %516 = vsyncadd [#allocation5], 4294967280 }
 0x2d3   :  { %341 = vsyncpa [#allocation4], 1 }
 0x2d4   :  { %342 = vsyncpa [#allocation7], 1 }
 0x2d5   :  { %343 = vsyncpa [#allocation5], 1 }

</bundles_post_ra>
